<compile_context>
chip_gen: v5e
topology: v5e:2x2
jax: 0.10.0
libtpu: 0.0.40
codegen_flags: <defaults>
</compile_context>

<pallas_src>
from functools import partial

import jax
import jax.numpy as jnp
from jax.experimental import pallas as pl
from jax.experimental.pallas import tpu as pltpu  # noqa: F401  (TPU backend import)


def _identity_kernel(x_ref, o_ref):
    # Pure copy: the only "compute" one could attribute to an empty forward.
    o_ref[...] = x_ref[...]


@partial(jax.jit, static_argnames=())
def pallas_identity(x: jax.Array) -> jax.Array:
    """Demonstration-only identity via a single-block, lane-dense Pallas copy.

    NOT called from MyModelPallas.forward (which is a no-op, like the reference).
    Jitted so the surrounding reshapes are free layout views, not extra dispatches.
    """
    orig_shape = x.shape
    total = x.size
    lanes = 128
    assert total % lanes == 0, "demo expects element count divisible by 128"
    # Lane-dense 2D view: last dim maps to the full 128-lane axis (2 full vregs).
    x2d = x.reshape(total // lanes, lanes)
    out2d = pl.pallas_call(
        _identity_kernel,
        out_shape=jax.ShapeDtypeStruct(x2d.shape, x2d.dtype),
        # Single full-array block, no grid: at 8 KiB any grid is pure overhead.
        in_specs=[pl.BlockSpec(x2d.shape, lambda: (0, 0))],
        out_specs=pl.BlockSpec(x2d.shape, lambda: (0, 0)),
        # No input_output_aliases: distinct output buffer, `x` stays valid.
    )(x2d)
    return out2d.reshape(orig_shape)


class MyModelPallas:
    """JAX/Pallas counterpart of the (empty) PyTorch MyModel."""

    def __init__(self):
        # No parameters in the PyTorch module's __init__.
        pass

    def forward(self, x):
        # TODO(synk): PyTorch forward is `pass` (returns None); there is no op to
        # translate. Per perf review, NO kernel is launched here — forward is free.
        return None

    __call__ = forward


if __name__ == "__main__":
    key = jax.random.PRNGKey(0)
    x = jax.random.normal(key, (2, 4, 16, 16), dtype=jnp.float32)

    model = MyModelPallas()

    # Exact-semantics forward: a no-op that returns None (zero runtime cost).
    out = model(x)
    assert out is None

    # Demonstration-only Pallas kernel run (outside the model's hot path).
    y = pallas_identity(x)
    jax.block_until_ready(y)
    assert y.shape == x.shape and y.dtype == x.dtype
    # `x` was never donated or aliased, so it is safe to read here.
    assert bool(jnp.array_equal(y, x))

    print("KERNEL_OK")
</pallas_src>

<mosaic_0001>
module attributes {stable_mosaic.version = 11 : i64} {
  func.func @_identity_kernel(%arg0: memref<16x128xf32, #tpu.memory_space<vmem>>, %arg1: memref<16x128xf32, #tpu.memory_space<vmem>>) attributes {dimension_semantics = [], scalar_prefetch = 0 : i64, scratch_operands = 0 : i64, tpu.core_type = #tpu.core_type<tc>} {
    %c0 = arith.constant 0 : index
    %c0_0 = arith.constant 0 : index
    %0 = vector.load %arg0[%c0, %c0_0] : memref<16x128xf32, #tpu.memory_space<vmem>>, vector<16x128xf32>
    %c0_1 = arith.constant 0 : index
    %c0_2 = arith.constant 0 : index
    %1 = vector.load %arg1[%c0_1, %c0_2] : memref<16x128xf32, #tpu.memory_space<vmem>>, vector<16x128xf32>
    tpu.vector_store %arg1[%c0_1, %c0_2], %0 {strides = array<i32>} : memref<16x128xf32, #tpu.memory_space<vmem>>, vector<16x128xf32>,
    return
  }
}

</mosaic_0001>

<bundles_post_ra>
// kernel: pallas_identity.1
= control target key start
LH: loop header
LB: loop body
LE: loop exit
PB: predicated region body
PF: predicated region fallthrough
CT: control target
= control target key end

     0   :  { %s38_s0 = inlined_call_operand.vmem [shape: f32[16,128], index: 0, kind: input, shape index: {}]   ;;  %s39_s1 = inlined_call_operand.vmem [shape: f32[16,128], index: 1, kind: output, shape index: {}]  }
   0x1   :  { %v8_v0 = vld [vmem:[%s38_s0] sm:$0xff]  ;;  %v9_v1 = vld [vmem:[%s38_s0 + $0x8] sm:$0xff] }
   0x2   :  { %10 = vst [vmem:[%s39_s1] sm:$0xff] %v8_v0 }
   0x3   :  { %11 = vst [vmem:[%s39_s1 + $0x8] sm:$0xff] %v9_v1 }

</bundles_post_ra>
